<compile_context>
chip_gen: v7x
topology: tpu7x:2x2x1
jax: 0.10.0
libtpu: 0.0.40
codegen_flags: <defaults>
</compile_context>

<pallas_src>
import jax
import jax.numpy as jnp
from jax.experimental import pallas as pl
from jax.experimental.pallas import tpu as pltpu


def dpe_kernel(x_ref, w_ref, o_ref):
    # One output tile: (tm, tn) = (tm, K) @ (K, tn).  Bias is pre-folded into w.
    o_ref[...] = jnp.dot(
        x_ref[...], w_ref[...], preferred_element_type=jnp.float32
    ).astype(o_ref.dtype)


def _round_up(a, m):
    return ((a + m - 1) // m) * m


def fold_bias_into_weight(w_t, b, num_rows):
    """One-time parameter transform: coords @ w_fold == coords @ w_t + b.

    Valid because each coordinate row has exactly one 1 in its first
    `num_rows` columns (the row one-hot block).
    """
    return w_t.at[:num_rows, :].add(b)


def discrete_position_embedding(coords, w_fold, *, tm_max=1024, tn_max=2048,
                                out_dtype=jnp.float32):
    """coords: [M, K] one-hot rows, w_fold: [K, N] bias-folded W^T -> [M, N]."""
    M, K = coords.shape
    K2, N = w_fold.shape
    assert K == K2, "weight / coordinate inner-dim mismatch"

    # --- M tiling: prefer the full dim (no padding / no output slice). -------
    if M <= tm_max:
        tm_eff, Mp = M, M
    else:
        tm_eff = tm_max                      # multiple of 8 (sublane)
        Mp = _round_up(M, tm_eff)

    # --- N tiling: prefer the full dim so the weight tile is grid-invariant. -
    if N <= tn_max:
        tn_eff, Np = N, N
    else:
        tn_eff = tn_max                      # multiple of 128 (lane-dense vst)
        Np = _round_up(N, tn_eff)

    # v7x megacore: if a *large* problem collapsed to a single tile, split M in
    # two so both TensorCores get work (only when it splits without padding).
    out_bytes = M * N * jnp.dtype(out_dtype).itemsize
    if (Mp // tm_eff) * (Np // tn_eff) == 1 and out_bytes >= (2 << 20) and M % 16 == 0:
        tm_eff = M // 2                      # multiple of 8 since M % 16 == 0

    # Zero-pad only in the large fallback case (zeros contribute nothing).
    x = coords if Mp == M else jnp.pad(coords, ((0, Mp - M), (0, 0)))
    w = w_fold if Np == N else jnp.pad(w_fold, ((0, 0), (0, Np - N)))

    # Double-buffered VMEM footprint; raise the scoped limit only when the
    # default (16 MiB on v5e) would force the pipeline to degrade.
    vmem_needed = (
        2 * 4 * (tm_eff * K + K * tn_eff)
        + 2 * jnp.dtype(out_dtype).itemsize * tm_eff * tn_eff
    )
    vmem_limit = (32 << 20) if vmem_needed > (14 << 20) else None

    out = pl.pallas_call(
        dpe_kernel,
        out_shape=jax.ShapeDtypeStruct((Mp, Np), out_dtype),
        grid_spec=pltpu.PrefetchScalarGridSpec(
            num_scalar_prefetch=0,
            grid=(Mp // tm_eff, Np // tn_eff),
            in_specs=[
                pl.BlockSpec((tm_eff, K), lambda i, j: (i, 0)),  # coord rows
                pl.BlockSpec((K, tn_eff), lambda i, j: (0, j)),  # weight cols
            ],
            out_specs=pl.BlockSpec((tm_eff, tn_eff), lambda i, j: (i, j)),
        ),
        compiler_params=pltpu.CompilerParams(
            dimension_semantics=("parallel", "parallel"),
            vmem_limit_bytes=vmem_limit,
        ),
    )(x, w)

    if Mp != M or Np != N:   # rare large-problem fallback only
        out = out[:M, :N]
    return out


def get_coordinate_matrix(num_rows, num_cols):
    """JAX equivalent of DiscretePositionEmbedding.get_coordinate_matrix."""
    row_onehot = jnp.repeat(jnp.eye(num_rows, dtype=jnp.float32), num_cols, axis=0)
    col_onehot = jnp.tile(jnp.eye(num_cols, dtype=jnp.float32), (num_rows, 1))
    return jnp.concatenate([row_onehot, col_onehot], axis=1)  # (R*C, R+C)


if __name__ == "__main__":
    num_rows, num_cols, output_dim = 4, 4, 32

    coords = get_coordinate_matrix(num_rows, num_cols)  # (16, 8), fixed buffer
    in_dim = num_rows + num_cols

    # Deterministic "nn.Linear" params (PyTorch-style uniform fan-in init).
    key = jax.random.PRNGKey(0)
    kw, kb = jax.random.split(key)
    bound = 1.0 / (in_dim ** 0.5)
    # PyTorch stores weight as (out, in); we keep the transposed (in, out)
    # layout so the output feature dim lands on TPU lanes.
    w_t = jax.random.uniform(
        kw, (in_dim, output_dim), minval=-bound, maxval=bound, dtype=jnp.float32
    )
    b = jax.random.uniform(
        kb, (output_dim,), minval=-bound, maxval=bound, dtype=jnp.float32
    )

    # One-time parameter transform (done at "init", not per call).
    w_fold = fold_bias_into_weight(w_t, b, num_rows)

    out = discrete_position_embedding(coords, w_fold)
    out = jax.block_until_ready(out)

    # Pure-JAX reference: coords @ W^T + b
    ref = coords @ w_t + b
    assert out.shape == (num_rows * num_cols, output_dim)
    assert jnp.allclose(out, ref, atol=1e-5, rtol=1e-5), "mismatch vs reference"

    print("KERNEL_OK")
</pallas_src>

<mosaic_0001>
module attributes {stable_mosaic.version = 11 : i64} {
  func.func @dpe_kernel(%arg0: i32, %arg1: i32, %arg2: memref<16x8xf32, #tpu.memory_space<vmem>>, %arg3: memref<8x32xf32, #tpu.memory_space<vmem>>, %arg4: memref<16x32xf32, #tpu.memory_space<vmem>>) attributes {dimension_semantics = [#tpu.dimension_semantics<parallel>, #tpu.dimension_semantics<parallel>], iteration_bounds = array<i64: 1, 1>, scalar_prefetch = 0 : i64, scratch_operands = 0 : i64, tpu.core_type = #tpu.core_type<tc>, window_params = [{transform_indices = @transform_0, window_bounds = array<i64: 16, 8>}, {transform_indices = @transform_1, window_bounds = array<i64: 8, 32>}, {transform_indices = @transform_2, window_bounds = array<i64: 16, 32>}]} {
    %c0 = arith.constant 0 : index
    %c0_0 = arith.constant 0 : index
    %0 = vector.load %arg2[%c0, %c0_0] : memref<16x8xf32, #tpu.memory_space<vmem>>, vector<16x8xf32>
    %c0_1 = arith.constant 0 : index
    %c0_2 = arith.constant 0 : index
    %1 = vector.load %arg3[%c0_1, %c0_2] : memref<8x32xf32, #tpu.memory_space<vmem>>, vector<8x32xf32>
    %cst = arith.constant dense<0.000000e+00> : vector<16x32xf32>
    %2 = tpu.matmul %0, %1, %cst {dimension_numbers = #tpu.dot_dimension_numbers<[1], [0], [0], [1], [0, 0, 1, 1], [], []>} : vector<16x8xf32>, vector<8x32xf32>, vector<16x32xf32> -> vector<16x32xf32>
    %c0_3 = arith.constant 0 : index
    %c0_4 = arith.constant 0 : index
    %3 = vector.load %arg4[%c0_3, %c0_4] : memref<16x32xf32, #tpu.memory_space<vmem>>, vector<16x32xf32>
    tpu.vector_store %arg4[%c0_3, %c0_4], %2 {strides = array<i32>} : memref<16x32xf32, #tpu.memory_space<vmem>>, vector<16x32xf32>,
    return
  }
  func.func @transform_0(%arg0: i32, %arg1: i32) -> (i32, i32) {
    %c0_i32 = arith.constant 0 : i32
    %c0_i32_0 = arith.constant 0 : i32
    return %arg0, %c0_i32 : i32, i32
  }
  func.func @transform_1(%arg0: i32, %arg1: i32) -> (i32, i32) {
    %c0_i32 = arith.constant 0 : i32
    %c0_i32_0 = arith.constant 0 : i32
    return %c0_i32, %arg1 : i32, i32
  }
  func.func @transform_2(%arg0: i32, %arg1: i32) -> (i32, i32) {
    %c0_i32 = arith.constant 0 : i32
    return %arg0, %arg1 : i32, i32
  }
}

</mosaic_0001>

<bundles_post_ra>
// kernel: tpu_custom_call.1
= control target key start
LH: loop header
LB: loop body
LE: loop exit
PB: predicated region body
PF: predicated region fallthrough
CT: control target
= control target key end

     0   :  { %vm15_vm0 = vcmask 64512   ;;  %s192_s0 = inlined_call_operand.vmem [shape: f32[16,8], index: 0, kind: input, shape index: {}]   ;;  %s193_s1 = inlined_call_operand.vmem [shape: f32[8,32], index: 1, kind: input, shape index: {}]   ;;  %s194_s2 = inlined_call_operand.hbm [shape: f32[16,32], index: 2, kind: output, shape index: {}]  }
   0x1   :  { %v14_v0 = vld [vmem:[%s193_s1] sm:$0xff]  ;;  %v13_v2 = vld [vmem:[%s192_s0 + $0x8] sm:$0xff] }
   0x2   :  { %v12_v1 = vld [vmem:[%s192_s0] sm:$0xff]  ;;  %121 = vmatprep.subr.mxu0 %v14_v0 }
   0x3   :  { %123 = vmatprep.mubr.msk.f32.mxu0 %vm15_vm0, %v12_v1 }
   0x4   :  { %7 = vsyncpa [#allocation3], 0  ;;  %122 = vmatpush3.msra.mxu0 %v14_v0  ;;  %s153_s15 = smov [#allocation2]   ;;  %vm97_vm1 = vcmask 261120  }
   0x5   :  { %124 = vmatmul.mubr.msk.f32.vlgmr.msra.gmra.mrb[0].mxu0 %vm15_vm0, %v13_v2  ;;  %s105_s16 = sshll.u32 %s153_s15, 4  ;;  %s106_s16 = int_to_ptr.vmem [resolvable:$true] %s105_s16 }
   0x6   :  { %s129_s1 = scalar_lea.vmem %s106_s16, 256  ;;  %p134_p1 = scmp.lt.s32.totalorder %s106_s16, %s106_s16 }
   0x7   :  { %p130_p0 = scmp.ne.s32.totalorder %s106_s16, %s129_s1  ;;  %p135_p2 = scmp.lt.s32.totalorder %s129_s1, %s129_s1 }
   0x9   :  { %p136_p3 = por %p135_p2, %p134_p1 }
   0xb   :  { %p137_p4 = pnand %p136_p3, %p130_p0 }
  0xd8   :  { %v125_v3 = vpop.f32.mrb[0].mxu0 }
  0xd9   :  { %99 = vst.msk [vmem:[#allocation2 + $0x8] sm:$0xff] %vm97_vm1, %v125_v3  ;;  %v88_v4 = vpop.f32.mrb[1].mxu0 }
  0xda   :  { %98 = vst.msk [vmem:[#allocation2] sm:$0xff] %vm97_vm1, %v88_v4 }
  0xdb   :  { %140 = shalt.err (!%p137_p4)
}
  0xdc   :  { %s141_s18 = scalar_lea.hbm %s194_s2, 256 }
  0xdd   :  { %p142_p5 = scmp.ne.s32.totalorder %s194_s2, %s141_s18  ;;  %p145_p6 = scmp.lt.u32.totalorder %s141_s18, %s194_s2 }
  0xdf   :  { %p147_p7 = pnand %p145_p6, %p142_p5 }
  0xe1   :  { %150 = shalt.err (!%p147_p7)
}
  0xe2   :  { %s154_s23 = smov 128   ;;  %s155_s24 = smov 8  }
  0xe3   :  { %111 = dma.vmem_to_hbm [thread:$0]  %s106_s16, 256, %s194_s2, [#allocation3], %s154_s23, %s154_s23, %s155_s24  }
  0xe4   :  { %151 = dma.done.wait [#allocation3], 256  }
  0xe5   :  { %152 = vsyncadd [#allocation3], 4294967040 }
  0xe6   :  { %115 = vsyncpa [#allocation3], 1 }

</bundles_post_ra>
